<compile_context>
chip_gen: v7x
topology: tpu7x:2x2x1
jax: 0.10.0
libtpu: 0.0.40
codegen_flags: <defaults>
</compile_context>

<pallas_src>
import functools

import jax
import jax.numpy as jnp
from jax.experimental import pallas as pl
from jax.experimental.pallas import tpu as pltpu


def _dice_partial_kernel(p_ref, t_ref, num_ref, den_ref, *,
                         p_val, fg_weight, cols, tile_cols, need_mask):
    """Accumulate per-row sums of w*p*t and w*(p^p + t^p) over the lane axis."""
    k = pl.program_id(1)  # reduction (cols) axis, last in grid

    @pl.when(k == 0)
    def _init():
        num_ref[...] = jnp.zeros_like(num_ref)
        den_ref[...] = jnp.zeros_like(den_ref)

    pr = p_ref[...].astype(jnp.float32)          # (tile_rows, tile_cols)
    tg = t_ref[...].astype(jnp.float32)

    def _accumulate(pr, tg):
        w = jnp.where(tg == 1.0, jnp.float32(fg_weight), jnp.float32(1.0))
        if float(p_val).is_integer() and p_val >= 1.0:
            ip = int(p_val)                      # static multiply chain (VALU)

            def _ipow(x):
                r = x
                for _ in range(ip - 1):
                    r = r * x
                return r

            pow_sum = _ipow(pr) + _ipow(tg)
        else:                                    # truly fractional exponent
            pow_sum = pr ** jnp.float32(p_val) + tg ** jnp.float32(p_val)
        # Per-step lane reduction (XLU) straight into the resident (tr, 1)
        # output blocks (P3 accumulator pattern, no scratch needed).
        num_ref[...] += jnp.sum(w * (pr * tg), axis=1, keepdims=True)
        den_ref[...] += jnp.sum(w * pow_sum, axis=1, keepdims=True)

    if need_mask:
        last = pl.num_programs(1) - 1

        @pl.when(k < last)
        def _body():                             # hot path: no mask ops
            _accumulate(pr, tg)

        @pl.when(k == last)
        def _body_ragged():
            # Zero inputs past the true column extent of the ragged last tile.
            # Block padding holds unspecified bits; zeroing pr/tg keeps both
            # the numerator and the weighted denominator contributions at 0
            # even if the padding decodes to NaN/Inf.
            col = jax.lax.broadcasted_iota(jnp.int32, pr.shape, 1) + k * tile_cols
            valid = col < cols
            _accumulate(jnp.where(valid, pr, 0.0), jnp.where(valid, tg, 0.0))
    else:
        _accumulate(pr, tg)


def _vmem_capacity_bytes():
    try:
        cap = getattr(pltpu.get_tpu_info(), "vmem_capacity_bytes", None)
        if cap:
            return int(cap)
    except Exception:
        pass
    return 64 * 1024 * 1024   # v7x-safe lower bound


def binary_dice_loss(predict, target, *, smooth=1.0, p=2, reduction="mean",
                     ignore_index=None, foreground_weight=2.5, tile_d=None):
    if reduction not in ("mean", "sum", "none"):
        raise Exception("Unexpected reduction {}".format(reduction))
    # TODO(synk): ignore_index requires dynamic-shape boolean gather; not supported.
    assert ignore_index is None, "ignore_index is not implemented in the Pallas kernel"
    assert predict.shape[0] == target.shape[0], "predict & target batch size don't match"

    if predict.ndim > 1 and predict.shape[1] == 1:
        predict = jnp.squeeze(predict, axis=1)

    n = predict.shape[0]
    pred2 = predict.reshape(n, -1)    # native dtype: no upcast / pad copies in HBM
    targ2 = target.reshape(n, -1)
    d = pred2.shape[1]
    assert targ2.shape[1] == d, "flattened predict/target sizes don't match"

    # Sublane fill: fold each row's D into `sub` chunk rows so small batches
    # occupy all 8 sublanes and the row axis can be sharded across v7x's two
    # TensorCores. Row-major reshape => summing a batch row's `sub` chunk rows
    # equals summing its full D extent.
    sub = 8
    if n * sub < 16 and d % 16 == 0:
        sub = 16                       # N == 1: still give the 2nd TC a row tile
    if d >= sub and d % sub == 0:
        rows, cols = n * sub, d // sub
        pred2 = pred2.reshape(rows, cols)
        targ2 = targ2.reshape(rows, cols)
    else:
        sub = 1                        # fallback: D not a multiple of 8
        rows, cols = n, d

    bytes_per_col = pred2.dtype.itemsize + targ2.dtype.itemsize

    # Per-grid-step VMEM footprint: double-buffered inputs plus ~3 float32
    # compute temporaries per element (casts / weight map / products).
    def _footprint(tr, tc):
        return tr * tc * (2 * bytes_per_col + 12)

    vmem_cap = _vmem_capacity_bytes()
    in_budget = min(int(vmem_cap * 0.45), 40 * 1024 * 1024)

    # --- row (sublane) tile ------------------------------------------------
    if rows % 8 == 0:
        tile_rows = 8
        # Sub-32-bit inputs pack 16 (bf16) / 32 (int8) sublanes per vreg; widen
        # the row tile accordingly while keeping >= 2 row tiles for megacore.
        packing = max(1, 4 // min(pred2.dtype.itemsize, targ2.dtype.itemsize))
        while (tile_rows < 8 * packing and rows % (tile_rows * 2) == 0
               and rows // (tile_rows * 2) >= 2):
            tile_rows *= 2
    else:
        tile_rows = rows               # small-N fallback (full-extent rows block)

    # --- lane (cols) tile ----------------------------------------------------
    tc_cap = max(128, (in_budget // (tile_rows * (2 * bytes_per_col + 12)))
                 // 128 * 128)
    if tile_d is not None:
        # User knob: round to the 128-lane constraint, then clamp to budget.
        tile_cols = cols if tile_d >= cols else max(128, (int(tile_d) // 128) * 128)
    else:
        tile_cols = cols
    if tile_cols < cols or _footprint(tile_rows, tile_cols) > in_budget:
        tile_cols = min(tile_cols, tc_cap)
    tile_cols = min(tile_cols, cols)

    # --- grow the row tile when cols is small --------------------------------
    # (fewer grid steps / bigger DMAs; keep >= 2 row tiles for megacore)
    if rows % 8 == 0:
        target_step_bytes = 4 * 1024 * 1024
        while (rows % (tile_rows * 2) == 0 and rows // (tile_rows * 2) >= 2
               and tile_rows * tile_cols * bytes_per_col < target_step_bytes
               and _footprint(tile_rows * 2, tile_cols) <= in_budget):
            tile_rows *= 2

    need_mask = (cols % tile_cols) != 0
    grid = (rows // tile_rows, pl.cdiv(cols, tile_cols))

    vmem_limit = int(min(max(_footprint(tile_rows, tile_cols) + (8 << 20),
                             32 << 20),
                         int(vmem_cap * 0.9)))

    kernel = functools.partial(
        _dice_partial_kernel, p_val=float(p), fg_weight=float(foreground_weight),
        cols=cols, tile_cols=tile_cols, need_mask=need_mask)

    num_rows, den_rows = pl.pallas_call(
        kernel,
        out_shape=(jax.ShapeDtypeStruct((rows, 1), jnp.float32),
                   jax.ShapeDtypeStruct((rows, 1), jnp.float32)),
        grid_spec=pltpu.PrefetchScalarGridSpec(
            num_scalar_prefetch=0,
            grid=grid,
            in_specs=[
                pl.BlockSpec((tile_rows, tile_cols), lambda i, k: (i, k)),
                pl.BlockSpec((tile_rows, tile_cols), lambda i, k: (i, k)),
            ],
            out_specs=(
                pl.BlockSpec((tile_rows, 1), lambda i, k: (i, 0)),
                pl.BlockSpec((tile_rows, 1), lambda i, k: (i, 0)),
            ),
        ),
        compiler_params=pltpu.CompilerParams(
            dimension_semantics=("parallel", "arbitrary"),
            vmem_limit_bytes=vmem_limit),
    )(pred2, targ2)

    # Tiny final combine (sub*N scalars) in XLA: fold sublane chunks back into
    # per-batch-row sums, add smooth, form the loss, reduce.
    num = num_rows[:, 0].reshape(n, sub).sum(axis=1) + jnp.float32(smooth)
    den = den_rows[:, 0].reshape(n, sub).sum(axis=1) + jnp.float32(smooth)
    loss = 1.0 - num / den
    if reduction == "mean":
        return loss.mean()
    if reduction == "sum":
        return loss.sum()
    return loss


def _reference(predict, target, smooth=1.0, p=2, reduction="mean",
               foreground_weight=2.5):
    if predict.ndim > 1 and predict.shape[1] == 1:
        predict = jnp.squeeze(predict, axis=1)
    n = predict.shape[0]
    pr = predict.reshape(n, -1).astype(jnp.float32)
    tg = target.reshape(n, -1).astype(jnp.float32)
    w = jnp.where(tg == 1.0, foreground_weight, 1.0)
    num = jnp.sum(w * pr * tg, axis=1) + smooth
    den = jnp.sum(w * (pr ** p + tg ** p), axis=1) + smooth
    loss = 1.0 - num / den
    if reduction == "mean":
        return loss.mean()
    if reduction == "sum":
        return loss.sum()
    return loss


if __name__ == "__main__":
    key = jax.random.PRNGKey(0)
    k1, k2, k3, k4, k5, k6, k7, k8 = jax.random.split(key, 8)

    # Case 1: NCHW inputs, D = C*H*W = 1024 (sublane-fill reshape path).
    predict = jax.nn.sigmoid(jax.random.normal(k1, (2, 4, 16, 16), jnp.float32))
    target = (jax.random.uniform(k2, (2, 4, 16, 16)) > 0.5).astype(jnp.float32)
    for reduction in ("mean", "sum", "none"):
        out = jax.block_until_ready(
            binary_dice_loss(predict, target, smooth=1.0, p=2,
                             reduction=reduction, foreground_weight=2.5))
        ref = _reference(predict, target, reduction=reduction)
        assert jnp.allclose(out, ref, rtol=1e-4, atol=1e-5), (reduction, out, ref)

    # Case 2: bf16 predict with channel squeeze, D = 200 (reshape path, cols=25).
    p2 = jax.nn.sigmoid(jax.random.normal(k3, (2, 1, 10, 20), jnp.bfloat16))
    t2 = (jax.random.uniform(k4, (2, 10, 20)) > 0.5).astype(jnp.float32)
    out2 = jax.block_until_ready(binary_dice_loss(p2, t2, reduction="none"))
    ref2 = _reference(p2, t2, reduction="none")
    assert jnp.allclose(out2, ref2, rtol=1e-4, atol=1e-5), (out2, ref2)

    # Case 3: D = 273 (not a multiple of 8) exercises the 2D fallback path and,
    # with tile_d=128, the last-step ragged-lane mask.
    p3 = jax.nn.sigmoid(jax.random.normal(k5, (2, 3, 7, 13), jnp.float32))
    t3 = (jax.random.uniform(k6, (2, 3, 7, 13)) > 0.5).astype(jnp.float32)
    out3 = jax.block_until_ready(
        binary_dice_loss(p3, t3, reduction="none", tile_d=128))
    ref3 = _reference(p3, t3, reduction="none")
    assert jnp.allclose(out3, ref3, rtol=1e-4, atol=1e-5), (out3, ref3)

    # Case 4: multi-step reduction with a ragged last tile on the reshape path
    # (cols=1024, tile 384) and integer p=3 (multiply chain, no exp/log).
    p4 = jax.nn.sigmoid(jax.random.normal(k7, (4, 8, 32, 32), jnp.float32))
    t4 = (jax.random.uniform(k8, (4, 8, 32, 32)) > 0.5).astype(jnp.float32)
    out4 = jax.block_until_ready(
        binary_dice_loss(p4, t4, p=3, reduction="none", tile_d=384))
    ref4 = _reference(p4, t4, p=3, reduction="none")
    assert jnp.allclose(out4, ref4, rtol=1e-4, atol=1e-5), (out4, ref4)

    print("KERNEL_OK")
</pallas_src>

<mosaic_0001>
module attributes {stable_mosaic.version = 11 : i64} {
  func.func @_dice_partial_kernel(%arg0: i32, %arg1: i32, %arg2: memref<8x128xf32, #tpu.memory_space<vmem>>, %arg3: memref<8x128xf32, #tpu.memory_space<vmem>>, %arg4: memref<8x1xf32, #tpu.memory_space<vmem>>, %arg5: memref<8x1xf32, #tpu.memory_space<vmem>>) attributes {dimension_semantics = [#tpu.dimension_semantics<parallel>, #tpu.dimension_semantics<arbitrary>], iteration_bounds = array<i64: 2, 1>, scalar_prefetch = 0 : i64, scratch_operands = 0 : i64, tpu.core_type = #tpu.core_type<tc>, window_params = [{transform_indices = @transform_0, window_bounds = array<i64: 8, 128>}, {transform_indices = @transform_1, window_bounds = array<i64: 8, 128>}, {transform_indices = @transform_2, window_bounds = array<i64: 8, 1>}, {transform_indices = @transform_3, window_bounds = array<i64: 8, 1>}]} {
    %c0_i32 = arith.constant 0 : i32
    %0 = arith.cmpi eq, %arg1, %c0_i32 : i32
    %1 = arith.extui %0 : i1 to i32
    %c0_i32_0 = arith.constant 0 : i32
    %2 = arith.cmpi ne, %1, %c0_i32_0 : i32
    scf.if %2 {
      %cst_16 = arith.constant 0.000000e+00 : f32
      %26 = vector.broadcast %cst_16 : f32 to vector<8x1xf32>
      %c0_17 = arith.constant 0 : index
      %c0_18 = arith.constant 0 : index
      %27 = vector.load %arg4[%c0_17, %c0_18] : memref<8x1xf32, #tpu.memory_space<vmem>>, vector<8x1xf32>
      tpu.vector_store %arg4[%c0_17, %c0_18], %26 {strides = array<i32>} : memref<8x1xf32, #tpu.memory_space<vmem>>, vector<8x1xf32>,
      %cst_19 = arith.constant 0.000000e+00 : f32
      %28 = vector.broadcast %cst_19 : f32 to vector<8x1xf32>
      %c0_20 = arith.constant 0 : index
      %c0_21 = arith.constant 0 : index
      %29 = vector.load %arg5[%c0_20, %c0_21] : memref<8x1xf32, #tpu.memory_space<vmem>>, vector<8x1xf32>
      tpu.vector_store %arg5[%c0_20, %c0_21], %28 {strides = array<i32>} : memref<8x1xf32, #tpu.memory_space<vmem>>, vector<8x1xf32>,
    } else {
    }
    %c0 = arith.constant 0 : index
    %c0_1 = arith.constant 0 : index
    %3 = vector.load %arg2[%c0, %c0_1] : memref<8x128xf32, #tpu.memory_space<vmem>>, vector<8x128xf32>
    %c0_2 = arith.constant 0 : index
    %c0_3 = arith.constant 0 : index
    %4 = vector.load %arg3[%c0_2, %c0_3] : memref<8x128xf32, #tpu.memory_space<vmem>>, vector<8x128xf32>
    %cst = arith.constant 1.000000e+00 : f32
    %5 = vector.broadcast %cst : f32 to vector<8x128xf32>
    %6 = arith.cmpf oeq, %4, %5 : vector<8x128xf32>
    %cst_4 = arith.constant 2.500000e+00 : f32
    %cst_5 = arith.constant 1.000000e+00 : f32
    %7 = vector.broadcast %cst_4 : f32 to vector<8x128xf32>
    %8 = vector.broadcast %cst_5 : f32 to vector<8x128xf32>
    %9 = arith.select %6, %7, %8 : vector<8x128xi1>, vector<8x128xf32>
    %10 = arith.mulf %3, %3 : vector<8x128xf32>
    %11 = arith.mulf %4, %4 : vector<8x128xf32>
    %12 = arith.addf %10, %11 : vector<8x128xf32>
    %c0_6 = arith.constant 0 : index
    %c0_7 = arith.constant 0 : index
    %13 = vector.load %arg4[%c0_6, %c0_7] : memref<8x1xf32, #tpu.memory_space<vmem>>, vector<8x1xf32>
    %14 = arith.mulf %3, %4 : vector<8x128xf32>
    %15 = arith.mulf %9, %14 : vector<8x128xf32>
    %cst_8 = arith.constant dense<0.000000e+00> : vector<8xf32>
    %16 = vector.multi_reduction <add>, %15, %cst_8 [1] : vector<8x128xf32> to vector<8xf32>
    %17 = vector.shape_cast %16 : vector<8xf32> to vector<8x1xf32>
    %18 = arith.addf %13, %17 : vector<8x1xf32>
    %c0_9 = arith.constant 0 : index
    %c0_10 = arith.constant 0 : index
    %19 = vector.load %arg4[%c0_9, %c0_10] : memref<8x1xf32, #tpu.memory_space<vmem>>, vector<8x1xf32>
    tpu.vector_store %arg4[%c0_9, %c0_10], %18 {strides = array<i32>} : memref<8x1xf32, #tpu.memory_space<vmem>>, vector<8x1xf32>,
    %c0_11 = arith.constant 0 : index
    %c0_12 = arith.constant 0 : index
    %20 = vector.load %arg5[%c0_11, %c0_12] : memref<8x1xf32, #tpu.memory_space<vmem>>, vector<8x1xf32>
    %21 = arith.mulf %9, %12 : vector<8x128xf32>
    %cst_13 = arith.constant dense<0.000000e+00> : vector<8xf32>
    %22 = vector.multi_reduction <add>, %21, %cst_13 [1] : vector<8x128xf32> to vector<8xf32>
    %23 = vector.shape_cast %22 : vector<8xf32> to vector<8x1xf32>
    %24 = arith.addf %20, %23 : vector<8x1xf32>
    %c0_14 = arith.constant 0 : index
    %c0_15 = arith.constant 0 : index
    %25 = vector.load %arg5[%c0_14, %c0_15] : memref<8x1xf32, #tpu.memory_space<vmem>>, vector<8x1xf32>
    tpu.vector_store %arg5[%c0_14, %c0_15], %24 {strides = array<i32>} : memref<8x1xf32, #tpu.memory_space<vmem>>, vector<8x1xf32>,
    return
  }
  func.func @transform_0(%arg0: i32, %arg1: i32) -> (i32, i32) {
    %c0_i32 = arith.constant 0 : i32
    return %arg0, %arg1 : i32, i32
  }
  func.func @transform_1(%arg0: i32, %arg1: i32) -> (i32, i32) {
    %c0_i32 = arith.constant 0 : i32
    return %arg0, %arg1 : i32, i32
  }
  func.func @transform_2(%arg0: i32, %arg1: i32) -> (i32, i32) {
    %c0_i32 = arith.constant 0 : i32
    %c0_i32_0 = arith.constant 0 : i32
    return %arg0, %c0_i32 : i32, i32
  }
  func.func @transform_3(%arg0: i32, %arg1: i32) -> (i32, i32) {
    %c0_i32 = arith.constant 0 : i32
    %c0_i32_0 = arith.constant 0 : i32
    return %arg0, %c0_i32 : i32, i32
  }
}

</mosaic_0001>

<bundles_post_ra>
// kernel: tpu_custom_call.1
= control target key start
LH: loop header
LB: loop body
LE: loop exit
PB: predicated region body
PF: predicated region fallthrough
CT: control target
= control target key end

     0   :  { %9 = vsyncpa [#allocation3], 0  ;;  %s805_s0 = inlined_call_operand.hbm [shape: f32[16,128], index: 0, kind: input, shape index: {}]   ;;  %s806_s1 = inlined_call_operand.hbm [shape: f32[16,128], index: 1, kind: input, shape index: {}]   ;;  %s807_s2 = inlined_call_operand.vmem [shape: f32[16,1], index: 2, kind: output, shape index: {0}]   ;;  %s808_s3 = inlined_call_operand.vmem [shape: f32[16,1], index: 3, kind: output, shape index: {1}]  }
   0x1   :  { %11 = vsyncpa [#allocation3 + $0x1], 0 }
   0x2   :  { %12 = vsyncpa [#allocation5], 0 }
   0x3   :  { %14 = vsyncpa [#allocation5 + $0x1], 0  ;;  %s626_s12 = smov 0   ;;  %s628_s13 = smov 0  }
   0x4   :  { %s630_s14 = smov 0   ;;  %s632_s15 = smov 0  }
   0x5   :  { %s634_s16 = smov 0   ;;  %s636_s17 = smov 0  }
   0x6 LB: > { %s409_s18 = sadd.s32 4294967295, %s600_s17   ;;  %s32_s19 = sadd.s32 1, %s596_s16  ;;  %s600_s17 = sphi %s636_s17, %s20_s17   ;;  %s596_s16 = sphi %s634_s16, %s822_s16   ;;  %s592_s15 = sphi %s632_s15, %s821_s15   ;;  %s588_s14 = sphi %s630_s14, %s820_s14   ;;  %s584_s13 = sphi %s628_s13, %s819_s13   ;;  %s580_s12 = sphi %s626_s12, %s818_s12  }
   0x7   : > { %p34_p0 = scmp.ge.s32.totalorder %s32_s19, 2  ;;  %s41_s20 = sadd.s32 1, %s588_s14 }
   0x8   : > { %p48_p1 = scmp.ne.s32.totalorder %s588_s14, %s584_s13  ;;  %p49_p2 = scmp.eq.s32.totalorder %s600_s17, 0 }
   0x9   : > { %s824_s19 = smov (%p34_p0, %s32_s19), 0  ;;  %p54_p4 = scmp.ne.s32.totalorder %s584_s13, %s580_s12 }
   0xa   : > { %p662_p3 = por %p49_p2, %p48_p1  ;;  %s36_s22 = ssub.s32 %s596_s16, %s824_s19 }
   0xb   : > { %p55_p5 = scmp.eq.s32.totalorder %s409_s18, 0  ;;  %p39_p6 = scmp.eq.s32.totalorder %s36_s22, 0 }
   0xc   : > { %p435_p8 = scmp.lt.s32.totalorder %s600_s17, 2  ;;  %s678_s25 = sand.u32 1, %s588_s14  }
   0xd   : > { %p669_p7 = por %p55_p5, %p54_p4  ;;  %s414_s26 = sshll.u32 %s596_s16, 7 }
   0xe   : > { %s675_s24 = scalar_select %p39_p6, %s588_s14, %s41_s20  }
   0xf   : > { %s811_s23 = scalar_select %p669_p7, 1, 0 }
  0x10   : > { %s413_s27 = sshll.u32 %s678_s25, 3  ;;  %s687_s30 = scalar_lea.hbm %s805_s0, %s414_s26 }
  0x11   : > { %s162_s4 = scalar_lea.vmem [#allocation2], %s413_s27  ;;  %p693_p9 = pnand %p435_p8, %p662_p3 }
  0x12   : > { %s170_s5 = sshll.u32 %s162_s4, 4  ;;  %s159_s7 = scalar_lea.sflag [#allocation3], %s678_s25  ;;  %s697_s5 = int_to_ptr.vmem [resolvable:$true] %s170_s5 }
  0x13   : > { %s486_s8 = scalar_lea.hbm %s687_s30, 128  ;;  %p488_p13 = pneg %p693_p9 }
  0x14   : > { %p487_p12 = scmp.ne.s32.totalorder %s687_s30, %s486_s8  ;;  %s491_s11 = scalar_lea.hbm %s805_s0, 256 }
  0x15   : > { %p492_p2 = scmp.lt.u32.totalorder %s687_s30, %s805_s0  ;;  %p493_p3 = scmp.lt.u32.totalorder %s491_s11, %s486_s8 }
  0x16   : > { %p489_p0 = pnand %p488_p13, %p487_p12  ;;  %p495_p5 = scmp.lt.u32.totalorder %s486_s8, %s687_s30 }
  0x17   : > { %p494_p4 = por %p493_p3, %p492_p2 }
  0x18   : > { %p490_p1 = pneg %p489_p0 }
  0x19   : > { %p496_p6 = por %p495_p5, %p494_p4 }
  0x1b   : > { %p497_p8 = pnand %p496_p6, %p490_p1 }
  0x1d   : > { %500 = shalt.err (!%p497_p8)
}
  0x1e   : > { %s501_s20 = scalar_lea.vmem %s697_s5, 128  ;;  %s602_s21 = smov [#allocation2]  }
  0x1f   : > { %p502_p12 = scmp.ne.s32.totalorder %s697_s5, %s501_s20  ;;  %s506_s22 = sshll.u32 %s602_s21, 4  ;;  %s507_s22 = int_to_ptr.vmem [resolvable:$false] %s506_s22 }
  0x20   : > { %s508_s28 = scalar_lea.vmem %s507_s22, 256  ;;  %p509_p11 = scmp.lt.s32.totalorder %s697_s5, %s507_s22 }
  0x21   : > { %p504_p0 = pnand %p502_p12, %p488_p13  ;;  %p510_p2 = scmp.lt.s32.totalorder %s508_s28, %s501_s20 }
  0x23   : > { %p505_p10 = pneg %p504_p0  ;;  %p511_p3 = por %p510_p2, %p509_p11 }
  0x25   : > { %p512_p4 = pnand %p511_p3, %p505_p10 }
  0x27   : > { %515 = shalt.err (!%p512_p4)
}
  0x28   : > { %431 = dma.hbm_to_vmem [thread:$0]  (!%p693_p9), %s687_s30, 128, %s697_s5, %s159_s7  }
  0x29   : > { %p813_p1 = scmp.lt.s32.totalorder %s600_s17, 3  ;;  %p814_p5 = scmp.ge.s32.totalorder %s600_s17, 1 }
  0x2a   : > { %s740_s9 = scalar_lea.hbm %s806_s1, %s414_s26  ;;  %s181_s10 = scalar_lea.vmem [#allocation4], %s413_s27 }
  0x2b   : > { %p731_p6 = pnand %p814_p5, %p813_p1  ;;  %s189_s11 = sshll.u32 %s181_s10, 4  ;;  %s190_s11 = int_to_ptr.vmem [resolvable:$true] %s189_s11 }
  0x2c   : > { %s178_s30 = scalar_lea.sflag [#allocation5], %s678_s25  ;;  %s516_s5 = scalar_lea.hbm %s740_s9, 128 }
  0x2d   : > { %s815_s29 = scalar_select %p731_p6, 1, 0 }
  0x2e   : > { %p517_p10 = scmp.ne.s32.totalorder %s740_s9, %s516_s5  ;;  %s521_s26 = scalar_lea.hbm %s806_s1, 256 }
  0x2f   : > { %p522_p12 = scmp.lt.u32.totalorder %s740_s9, %s806_s1  ;;  %p523_p0 = scmp.lt.u32.totalorder %s521_s26, %s516_s5 }
  0x30   : > { %p519_p11 = pnand %p517_p10, %p488_p13  ;;  %p525_p3 = scmp.lt.u32.totalorder %s516_s5, %s740_s9 }
  0x31   : > { %p524_p2 = por %p523_p0, %p522_p12 }
  0x32   : > { %p520_p8 = pneg %p519_p11 }
  0x33   : > { %p526_p4 = por %p525_p3, %p524_p2 }
  0x35   : > { %p527_p1 = pnand %p526_p4, %p520_p8 }
  0x37   : > { %530 = shalt.err (!%p527_p1)
}
  0x38   : > { %s531_s25 = scalar_lea.vmem %s190_s11, 128  ;;  %s603_s27 = smov [#allocation4]  }
  0x39   : > { %p532_p5 = scmp.ne.s32.totalorder %s190_s11, %s531_s25  ;;  %s536_s21 = sshll.u32 %s603_s27, 4  ;;  %s537_s21 = int_to_ptr.vmem [resolvable:$false] %s536_s21 }
  0x3a   : > { %s538_s22 = scalar_lea.vmem %s537_s21, 256  ;;  %p539_p7 = scmp.lt.s32.totalorder %s190_s11, %s537_s21 }
  0x3b   : > { %p534_p10 = pnand %p532_p5, %p488_p13  ;;  %p540_p6 = scmp.lt.s32.totalorder %s538_s22, %s531_s25 }
  0x3d   : > { %p535_p11 = pneg %p534_p10  ;;  %p541_p0 = por %p540_p6, %p539_p7 }
  0x3f   : > { %p542_p12 = pnand %p541_p0, %p535_p11 }
  0x41   : > { %545 = shalt.err (!%p542_p12)
}
  0x42   : > { %434 = dma.hbm_to_vmem [thread:$0]  (!%p693_p9), %s740_s9, 128, %s190_s11, %s178_s30  }
  0x43   : > { %p816_p8 = scmp.ne.s32.totalorder %s815_s29, 0 }
  0x44   : > { %s200_s28 = sand.u32 (!%p816_p8), 1, %s584_s13   ;;  %p817_p13 = scmp.ne.s32.totalorder (!%p816_p8), %s811_s23, 0 }
  0x45   : > { %198 = sbr.rel (%p816_p8) target bundleno = 234 (0xea), region = 28  ;;  %s418_s4 = sshll.u32 (!%p816_p8), %s200_s28, 3 }
  0x46   : > { %s201_s8 = scalar_lea.sflag (!%p816_p8), [#allocation3], %s200_s28  ;;  %s204_s10 = scalar_lea.vmem (!%p816_p8), [#allocation2], %s418_s4 }
  0x4c   : > { %571 = dma.done.wait (%p817_p13), %s201_s8, 128  }
  0x4d   : > { %573 = vsyncadd (%p817_p13), %s201_s8, 4294967168  ;;  %s210_s5 = scalar_lea.sflag [#allocation5], %s200_s28  ;;  %s213_s7 = scalar_lea.vmem [#allocation4], %s418_s4 }
  0x4e   : > { %575 = dma.done.wait (%p817_p13), %s210_s5, 128  }
  0x4f   : > { %577 = vsyncadd (%p817_p13), %s210_s5, 4294967168  ;;  %p244_p7 = scmp.lt.s32.totalorder %s592_s15, 1  ;;  %vm256_vm0 = vcmask 7168   ;;  %v604_v0 = vmov 0.0   ;;  %v259_v1 = vld [vmem:[%s204_s10] sm:$0xff]  ;;  %v260_v2 = vld [vmem:[%s213_s7] sm:$0xff] }
  0x50   : > { %vm261_vm1 = vcmp.eq.f32.partialorder %v260_v2, 1.0  ;;  %v267_v3 = vmul.f32 %v260_v2, %v259_v1  ;;  %v263_v4 = vmul.f32 %v259_v1, %v259_v1  ;;  %v264_v5 = vmul.f32 %v260_v2, %v260_v2 }
  0x51   : > { %s826_s15 = smov (!%p244_p7, %s592_s15), 1  ;;  %v605_v6 = vmov 1.0  }
  0x52   : > { %s420_s6 = sshll.u32 %s826_s15, 3  ;;  %v262_v7 = vsel %vm261_vm1, 2.5, %v605_v6  ;;  %v265_v9 = vadd.f32 %v264_v5, %v263_v4 }
  0x53   : > { %s247_s11 = scalar_lea.vmem %s807_s2, %s420_s6  ;;  %v268_v8 = vmul.f32 %v267_v3, %v262_v7  ;;  %s251_s30 = scalar_lea.vmem %s808_s3, %s420_s6 }
  0x54   : > { %257 = vst.msk [vmem:[%s247_s11] sm:$0xff] %vm256_vm0, %v604_v0  ;;  %v275_v10 = vmul.f32 %v265_v9, %v262_v7  ;;  %258 = vst.msk [vmem:[%s251_s30] sm:$0xff] %vm256_vm0, %v604_v0 }
  0x55   : > { %269 = vadd.xlane.f32.xlu0 %v268_v8 }
  0x59   : > { %276 = vadd.xlane.f32.xlu0 %v275_v10 }
  0x5b   : > { %v266_v11 = vld [vmem:[%s247_s11] sm:$0xff] }
  0x5c   : > { %v274_v14 = vld [vmem:[%s251_s30] sm:$0xff] }
  0xe2   : > { %v270_v12 = vpop.xlane.xlu0 %269 }
  0xe3   : > { %v271_v13 = vadd.f32 %v270_v12, %v266_v11 }
  0xe5   : > { %273 = vst.msk [vmem:[%s247_s11] sm:$0xff] %vm256_vm0, %v271_v13 }
  0xe6   : > { %v277_v15 = vpop.xlane.xlu0 %276 }
  0xe7   : > { %v278_v16 = vadd.f32 %v277_v15, %v274_v14 }
  0xe9   : > { %279 = vst.msk [vmem:[%s251_s30] sm:$0xff] %vm256_vm0, %v278_v16 }
  0xea PF: > { %s20_s17 = sadd.s32 1, %s600_s17   ;;  %s818_s12 = smov %s584_s13 }
  0xeb   : > { %p17_p9 = scmp.ge.s32.totalorder %s20_s17, 4   ;;  %s819_s13 = smov %s588_s14 }
  0xec   : > { %s820_s14 = smov %s675_s24  ;;  %s821_s15 = smov %s596_s16 }
  0xed   : > { %s822_s16 = smov %s824_s19  ;;  %19 = sbr.rel (!%p17_p9) target bundleno = 6 (0x6), region = 97 }
  0xf4   :  { %313 = vsyncpa [#allocation3], 1 }
  0xf5   :  { %315 = vsyncpa [#allocation3 + $0x1], 1 }
  0xf6   :  { %316 = vsyncpa [#allocation5], 1 }
  0xf7   :  { %318 = vsyncpa [#allocation5 + $0x1], 1 }

</bundles_post_ra>
